<compile_context>
chip_gen: v7x
topology: tpu7x:2x2x1
jax: 0.10.0
libtpu: 0.0.40
codegen_flags: <defaults>
</compile_context>

<pallas_src>
import jax
import jax.numpy as jnp
from jax.experimental import pallas as pl
from jax.experimental.pallas import tpu as pltpu


def _mlp_kernel(x_ref, w1_ref, b1_ref, w2_ref, b2_ref, o_ref, acc_ref):
    # x_ref : (TM, E)    w1_ref : (E, TH)   b1_ref : (1, TH) f32
    # w2_ref: (TH, E)    b2_ref : (1, E) f32   o_ref : (TM, E)   acc_ref: (TM, E) f32
    j = pl.program_id(1)

    @pl.when(j == 0)
    def _init():
        acc_ref[...] = jnp.zeros_like(acc_ref)

    x = x_ref[...]                                        # native dtype (bf16/f32)

    # c_fc chunk: MXU matmul, f32 accumulation; bias-add in f32.
    h = jnp.dot(x, w1_ref[...], preferred_element_type=jnp.float32) + b1_ref[...]

    # exact (erf-based) GELU in f32 — matches torch.nn.functional.gelu default.
    h = 0.5 * h * (1.0 + jax.lax.erf(h * 0.7071067811865476))

    # c_proj chunk: cast hidden back to operand dtype, accumulate in f32 scratch.
    acc_ref[...] += jnp.dot(h.astype(w2_ref.dtype), w2_ref[...],
                            preferred_element_type=jnp.float32)

    @pl.when(j == pl.num_programs(1) - 1)
    def _finalize():
        # dropout in eval mode == identity
        o_ref[...] = (acc_ref[...] + b2_ref[...]).astype(o_ref.dtype)


def _per_core_vmem_budget():
    """~85% of the per-TensorCore VMEM capacity; conservative fallback."""
    try:
        cap = pltpu.get_tpu_info().vmem_capacity_bytes
    except Exception:
        cap = 64 << 20          # v7x per-TC size; safe lower bound everywhere
    return int(0.85 * cap)


def _spec(shape, index_map, n_buffers=None):
    """BlockSpec, optionally with an explicit buffer count (Buffered(1) for
    grid-invariant operands). Falls back to the default if unsupported."""
    if n_buffers is not None:
        try:
            return pl.BlockSpec(shape, index_map,
                                pipeline_mode=pl.Buffered(n_buffers))
        except (AttributeError, TypeError):
            pass
    return pl.BlockSpec(shape, index_map)


def mlp_pallas(x, w1, b1, w2, b2, *, dropout_p: float = 0.0,
               tm: int | None = None, th: int | None = None):
    """x: [..., n_embed]. Weights are [in, out]; biases [out]."""
    assert dropout_p == 0.0, (
        "training-mode dropout not implemented in this kernel (eval semantics)")

    orig_shape = x.shape
    n_embed = orig_shape[-1]
    x2d = x.reshape(-1, n_embed)                      # (M, E)
    M = x2d.shape[0]
    hidden = w1.shape[1]                              # 4 * n_embed

    x_item = x.dtype.itemsize
    w_item = w1.dtype.itemsize
    budget = _per_core_vmem_budget()

    # ---- token-tile (M) heuristic: big tiles, but >=2 tiles for megacore ----
    if tm is None:
        if M <= 256:
            tm = M
        else:
            tm = min(512, pl.cdiv(M, 2))
            tm = max(128, (tm // 128) * 128)
    tm = max(1, min(tm, M))

    # Pad M to a multiple of tm: no masked partial last tile.
    Mp = pl.cdiv(M, tm) * tm
    if Mp != M:
        x2d = jnp.pad(x2d, ((0, Mp - M), (0, 0)))
    ni = Mp // tm

    # ---- fixed VMEM (independent of th) ----
    headroom = 4 << 20
    fixed = (2 * 2 * tm * n_embed * x_item        # x + out streams, double-buffered
             + n_embed * 4                        # b2 (f32, single-buffered)
             + tm * n_embed * 4                   # f32 accumulator scratch
             + headroom)

    # ---- hidden-chunk (th) heuristic ----
    if th is None:
        if hidden % 128 != 0:
            th = hidden                           # full-dim block (exempt from 128 rule)
        else:
            full_w = 2 * n_embed * hidden * w_item + hidden * 4   # single-buffered
            if fixed + full_w + 3 * tm * hidden * 4 <= budget:
                th = hidden                       # whole hidden dim stays resident
            else:
                per_th = 2 * (2 * n_embed * w_item + 4) + 3 * tm * 4
                th_max = max(128, (budget - fixed) // per_th)
                th = 128
                cand = (min(th_max, hidden) // 128) * 128
                while cand >= 128:
                    if hidden % cand == 0:
                        th = cand
                        break
                    cand -= 128
    th = min(th, hidden)
    assert hidden % th == 0, "hidden chunk size must divide 4*n_embed"
    nj = hidden // th

    b1_2d = b1.reshape(1, hidden).astype(jnp.float32)
    b2_2d = b2.reshape(1, n_embed).astype(jnp.float32)

    # Single-buffer grid-invariant operands (saves a full second VMEM copy).
    w_buffers = 1 if nj == 1 else None            # weights stream only when nj > 1

    in_specs = [
        _spec((tm, n_embed), lambda i, j: (i, 0)),                 # x tile
        _spec((n_embed, th), lambda i, j: (0, j), w_buffers),      # W1 chunk
        _spec((1, th),       lambda i, j: (0, j), w_buffers),      # b1 chunk
        _spec((th, n_embed), lambda i, j: (j, 0), w_buffers),      # W2 chunk
        _spec((1, n_embed),  lambda i, j: (0, 0), 1),              # b2 (invariant)
    ]
    out_spec = pl.BlockSpec((tm, n_embed), lambda i, j: (i, 0))

    # ---- explicit VMEM accounting -> chip-aware limit ----
    wbuf_n = 1 if nj == 1 else 2
    w_chunk = wbuf_n * (n_embed * th * w_item + th * n_embed * w_item + th * 4)
    h_temps = 3 * tm * th * 4                     # f32 h, erf temp, bf16 cast copy
    needed = fixed + w_chunk + h_temps
    vmem_limit = int(min(max(needed, 16 << 20), budget))

    # ---- advisory cost estimate for the XLA scheduler ----
    weight_bytes = (w1.size * w_item + w2.size * w_item + hidden * 4 + n_embed * 4)
    weight_passes = ni if nj > 1 else 1
    try:
        cost = pl.CostEstimate(
            flops=int(4 * Mp * n_embed * hidden),
            transcendentals=int(Mp * hidden),
            bytes_accessed=int(weight_passes * weight_bytes
                               + 2 * Mp * n_embed * x_item))
    except Exception:
        cost = None

    out = pl.pallas_call(
        _mlp_kernel,
        out_shape=jax.ShapeDtypeStruct((Mp, n_embed), x.dtype),
        grid_spec=pltpu.PrefetchScalarGridSpec(
            num_scalar_prefetch=0,
            grid=(ni, nj),
            in_specs=in_specs,
            out_specs=out_spec,
            scratch_shapes=[pltpu.VMEM((tm, n_embed), jnp.float32)],
        ),
        compiler_params=pltpu.CompilerParams(
            dimension_semantics=("parallel", "arbitrary"),
            vmem_limit_bytes=vmem_limit),
        cost_estimate=cost,
    )(x2d, w1, b1_2d, w2, b2_2d)

    if Mp != M:
        out = out[:M]
    return out.reshape(orig_shape)


def _reference_mlp(x, w1, b1, w2, b2):
    # Mirrors the kernel's numerics: native-dtype dots with f32 accumulation.
    h = jnp.dot(x, w1, preferred_element_type=jnp.float32) + b1.astype(jnp.float32)
    h = 0.5 * h * (1.0 + jax.lax.erf(h * 0.7071067811865476))
    y = (jnp.dot(h.astype(w2.dtype), w2, preferred_element_type=jnp.float32)
         + b2.astype(jnp.float32))
    return y.astype(x.dtype)


if __name__ == "__main__":
    key = jax.random.PRNGKey(0)

    # --- Test 1: small f32 shapes matching the module's forward ------------
    batch, seq, n_embed = 2, 8, 32
    hidden = 4 * n_embed
    kx, kw1, kb1, kw2, kb2 = jax.random.split(key, 5)

    x = jax.random.normal(kx, (batch, seq, n_embed), dtype=jnp.float32)
    w1 = jax.random.normal(kw1, (n_embed, hidden), dtype=jnp.float32) * 0.02
    b1 = jax.random.normal(kb1, (hidden,), dtype=jnp.float32) * 0.02
    w2 = jax.random.normal(kw2, (hidden, n_embed), dtype=jnp.float32) * 0.02
    b2 = jax.random.normal(kb2, (n_embed,), dtype=jnp.float32) * 0.02

    y = mlp_pallas(x, w1, b1, w2, b2)
    jax.block_until_ready(y)
    y_ref = _reference_mlp(x, w1, b1, w2, b2)
    assert y.shape == x.shape
    assert jnp.allclose(y, y_ref, atol=1e-5, rtol=1e-5), "f32 mismatch vs reference"

    # --- Test 2: bf16, larger M to exercise the tiled/parallel path ---------
    batch2, seq2, n_embed2 = 4, 128, 128           # M = 512 -> 2 token tiles
    hidden2 = 4 * n_embed2
    k2 = jax.random.PRNGKey(1)
    kx, kw1, kb1, kw2, kb2 = jax.random.split(k2, 5)

    xb = jax.random.normal(kx, (batch2, seq2, n_embed2), dtype=jnp.bfloat16)
    w1b = (jax.random.normal(kw1, (n_embed2, hidden2)) * 0.02).astype(jnp.bfloat16)
    b1b = (jax.random.normal(kb1, (hidden2,)) * 0.02).astype(jnp.bfloat16)
    w2b = (jax.random.normal(kw2, (hidden2, n_embed2)) * 0.02).astype(jnp.bfloat16)
    b2b = (jax.random.normal(kb2, (n_embed2,)) * 0.02).astype(jnp.bfloat16)

    yb = mlp_pallas(xb, w1b, b1b, w2b, b2b)
    jax.block_until_ready(yb)
    yb_ref = _reference_mlp(xb, w1b, b1b, w2b, b2b)
    assert yb.shape == xb.shape
    assert jnp.allclose(yb.astype(jnp.float32), yb_ref.astype(jnp.float32),
                        atol=2e-2, rtol=2e-2), "bf16 mismatch vs reference"

    # --- Test 3: force hidden-chunk accumulation path (nj > 1, ni > 1) ------
    batch3, seq3, n_embed3 = 2, 32, 128            # M = 64
    hidden3 = 4 * n_embed3
    k3 = jax.random.PRNGKey(2)
    kx, kw1, kb1, kw2, kb2 = jax.random.split(k3, 5)

    xc = jax.random.normal(kx, (batch3, seq3, n_embed3), dtype=jnp.float32)
    w1c = jax.random.normal(kw1, (n_embed3, hidden3), dtype=jnp.float32) * 0.02
    b1c = jax.random.normal(kb1, (hidden3,), dtype=jnp.float32) * 0.02
    w2c = jax.random.normal(kw2, (hidden3, n_embed3), dtype=jnp.float32) * 0.02
    b2c = jax.random.normal(kb2, (n_embed3,), dtype=jnp.float32) * 0.02

    yc = mlp_pallas(xc, w1c, b1c, w2c, b2c, tm=32, th=128)   # ni=2, nj=4
    jax.block_until_ready(yc)
    yc_ref = _reference_mlp(xc, w1c, b1c, w2c, b2c)
    assert yc.shape == xc.shape
    assert jnp.allclose(yc, yc_ref, atol=1e-4, rtol=1e-4), "chunked-path mismatch"

    print("KERNEL_OK")
</pallas_src>

<mosaic_0001>
module attributes {stable_mosaic.version = 11 : i64} {
  func.func @_mlp_kernel(%arg0: i32, %arg1: i32, %arg2: memref<16x32xf32, #tpu.memory_space<vmem>>, %arg3: memref<32x128xf32, #tpu.memory_space<vmem>>, %arg4: memref<1x128xf32, #tpu.memory_space<vmem>>, %arg5: memref<128x32xf32, #tpu.memory_space<vmem>>, %arg6: memref<1x32xf32, #tpu.memory_space<vmem>>, %arg7: memref<16x32xf32, #tpu.memory_space<vmem>>, %arg8: memref<16x32xf32, #tpu.memory_space<vmem>>) attributes {dimension_semantics = [#tpu.dimension_semantics<parallel>, #tpu.dimension_semantics<arbitrary>], iteration_bounds = array<i64: 1, 1>, scalar_prefetch = 0 : i64, scratch_operands = 1 : i64, tpu.core_type = #tpu.core_type<tc>, window_params = [{transform_indices = @transform_0, window_bounds = array<i64: 16, 32>}, {pipeline_mode = #tpu.pipeline_mode<synchronous>, transform_indices = @transform_1, window_bounds = array<i64: 32, 128>}, {pipeline_mode = #tpu.pipeline_mode<synchronous>, transform_indices = @transform_2, window_bounds = array<i64: 1, 128>}, {pipeline_mode = #tpu.pipeline_mode<synchronous>, transform_indices = @transform_3, window_bounds = array<i64: 128, 32>}, {pipeline_mode = #tpu.pipeline_mode<synchronous>, transform_indices = @transform_4, window_bounds = array<i64: 1, 32>}, {transform_indices = @transform_5, window_bounds = array<i64: 16, 32>}]} {
    %c0_i32 = arith.constant 0 : i32
    %0 = arith.cmpi eq, %arg1, %c0_i32 : i32
    %1 = arith.extui %0 : i1 to i32
    %c0_i32_0 = arith.constant 0 : i32
    %2 = arith.cmpi ne, %1, %c0_i32_0 : i32
    scf.if %2 {
      %cst_18 = arith.constant 0.000000e+00 : f32
      %25 = vector.broadcast %cst_18 : f32 to vector<16x32xf32>
      %c0_19 = arith.constant 0 : index
      %c0_20 = arith.constant 0 : index
      %26 = vector.load %arg8[%c0_19, %c0_20] : memref<16x32xf32, #tpu.memory_space<vmem>>, vector<16x32xf32>
      tpu.vector_store %arg8[%c0_19, %c0_20], %25 {strides = array<i32>} : memref<16x32xf32, #tpu.memory_space<vmem>>, vector<16x32xf32>,
    } else {
    }
    %c0 = arith.constant 0 : index
    %c0_1 = arith.constant 0 : index
    %3 = vector.load %arg2[%c0, %c0_1] : memref<16x32xf32, #tpu.memory_space<vmem>>, vector<16x32xf32>
    %c0_2 = arith.constant 0 : index
    %c0_3 = arith.constant 0 : index
    %4 = vector.load %arg3[%c0_2, %c0_3] : memref<32x128xf32, #tpu.memory_space<vmem>>, vector<32x128xf32>
    %cst = arith.constant dense<0.000000e+00> : vector<16x128xf32>
    %5 = tpu.matmul %3, %4, %cst {dimension_numbers = #tpu.dot_dimension_numbers<[1], [0], [0], [1], [0, 0, 1, 1], [], []>} : vector<16x32xf32>, vector<32x128xf32>, vector<16x128xf32> -> vector<16x128xf32>
    %c0_4 = arith.constant 0 : index
    %c0_5 = arith.constant 0 : index
    %6 = vector.load %arg4[%c0_4, %c0_5] : memref<1x128xf32, #tpu.memory_space<vmem>>, vector<1x128xf32>
    %7 = vector.broadcast %6 : vector<1x128xf32> to vector<16x128xf32>
    %8 = arith.addf %5, %7 : vector<16x128xf32>
    %cst_6 = arith.constant 5.000000e-01 : f32
    %9 = vector.broadcast %cst_6 : f32 to vector<16x128xf32>
    %10 = arith.mulf %9, %8 : vector<16x128xf32>
    %cst_7 = arith.constant 0.707106769 : f32
    %11 = vector.broadcast %cst_7 : f32 to vector<16x128xf32>
    %12 = arith.mulf %8, %11 : vector<16x128xf32>
    %13 = math.erf %12 : vector<16x128xf32>
    %cst_8 = arith.constant 1.000000e+00 : f32
    %14 = vector.broadcast %cst_8 : f32 to vector<16x128xf32>
    %15 = arith.addf %14, %13 : vector<16x128xf32>
    %16 = arith.mulf %10, %15 : vector<16x128xf32>
    %c0_9 = arith.constant 0 : index
    %c0_10 = arith.constant 0 : index
    %17 = vector.load %arg8[%c0_9, %c0_10] : memref<16x32xf32, #tpu.memory_space<vmem>>, vector<16x32xf32>
    %c0_11 = arith.constant 0 : index
    %c0_12 = arith.constant 0 : index
    %18 = vector.load %arg5[%c0_11, %c0_12] : memref<128x32xf32, #tpu.memory_space<vmem>>, vector<128x32xf32>
    %cst_13 = arith.constant dense<0.000000e+00> : vector<16x32xf32>
    %19 = tpu.matmul %16, %18, %cst_13 {dimension_numbers = #tpu.dot_dimension_numbers<[1], [0], [0], [1], [0, 0, 1, 1], [], []>} : vector<16x128xf32>, vector<128x32xf32>, vector<16x32xf32> -> vector<16x32xf32>
    %20 = arith.addf %17, %19 : vector<16x32xf32>
    %c0_14 = arith.constant 0 : index
    %c0_15 = arith.constant 0 : index
    %21 = vector.load %arg8[%c0_14, %c0_15] : memref<16x32xf32, #tpu.memory_space<vmem>>, vector<16x32xf32>
    tpu.vector_store %arg8[%c0_14, %c0_15], %20 {strides = array<i32>} : memref<16x32xf32, #tpu.memory_space<vmem>>, vector<16x32xf32>,
    %c0_i32_16 = arith.constant 0 : i32
    %22 = arith.cmpi eq, %arg1, %c0_i32_16 : i32
    %23 = arith.extui %22 : i1 to i32
    %c0_i32_17 = arith.constant 0 : i32
    %24 = arith.cmpi ne, %23, %c0_i32_17 : i32
    scf.if %24 {
      %c0_18 = arith.constant 0 : index
      %c0_19 = arith.constant 0 : index
      %25 = vector.load %arg8[%c0_18, %c0_19] : memref<16x32xf32, #tpu.memory_space<vmem>>, vector<16x32xf32>
      %c0_20 = arith.constant 0 : index
      %c0_21 = arith.constant 0 : index
      %26 = vector.load %arg6[%c0_20, %c0_21] : memref<1x32xf32, #tpu.memory_space<vmem>>, vector<1x32xf32>
      %27 = vector.broadcast %26 : vector<1x32xf32> to vector<16x32xf32>
      %28 = arith.addf %25, %27 : vector<16x32xf32>
      %c0_22 = arith.constant 0 : index
      %c0_23 = arith.constant 0 : index
      %29 = vector.load %arg7[%c0_22, %c0_23] : memref<16x32xf32, #tpu.memory_space<vmem>>, vector<16x32xf32>
      tpu.vector_store %arg7[%c0_22, %c0_23], %28 {strides = array<i32>} : memref<16x32xf32, #tpu.memory_space<vmem>>, vector<16x32xf32>,
    } else {
    }
    return
  }
  func.func @transform_0(%arg0: i32, %arg1: i32) -> (i32, i32) {
    %c0_i32 = arith.constant 0 : i32
    %c0_i32_0 = arith.constant 0 : i32
    return %arg0, %c0_i32 : i32, i32
  }
  func.func @transform_1(%arg0: i32, %arg1: i32) -> (i32, i32) {
    %c0_i32 = arith.constant 0 : i32
    %c0_i32_0 = arith.constant 0 : i32
    return %c0_i32, %arg1 : i32, i32
  }
  func.func @transform_2(%arg0: i32, %arg1: i32) -> (i32, i32) {
    %c0_i32 = arith.constant 0 : i32
    %c0_i32_0 = arith.constant 0 : i32
    return %c0_i32, %arg1 : i32, i32
  }
  func.func @transform_3(%arg0: i32, %arg1: i32) -> (i32, i32) {
    %c0_i32 = arith.constant 0 : i32
    %c0_i32_0 = arith.constant 0 : i32
    return %arg1, %c0_i32 : i32, i32
  }
  func.func @transform_4(%arg0: i32, %arg1: i32) -> (i32, i32) {
    %c0_i32 = arith.constant 0 : i32
    %c0_i32_0 = arith.constant 0 : i32
    %c0_i32_1 = arith.constant 0 : i32
    return %c0_i32, %c0_i32_0 : i32, i32
  }
  func.func @transform_5(%arg0: i32, %arg1: i32) -> (i32, i32) {
    %c0_i32 = arith.constant 0 : i32
    %c0_i32_0 = arith.constant 0 : i32
    return %arg0, %c0_i32 : i32, i32
  }
}

</mosaic_0001>

<bundles_post_ra>
// kernel: tpu_custom_call.1
= control target key start
LH: loop header
LB: loop body
LE: loop exit
PB: predicated region body
PF: predicated region fallthrough
CT: control target
= control target key end

     0   :  { %vm25_vm0 = vcmask 261120   ;;  %s534_s0 = inlined_call_operand.vmem [shape: f32[16,32], index: 0, kind: input, shape index: {}]   ;;  %s535_s1 = inlined_call_operand.vmem [shape: f32[32,128], index: 1, kind: input, shape index: {}]   ;;  %s536_s2 = inlined_call_operand.vmem [shape: f32[1,128], index: 2, kind: input, shape index: {}]   ;;  %s537_s3 = inlined_call_operand.vmem [shape: f32[128,32], index: 3, kind: input, shape index: {}]   ;;  %s538_s4 = inlined_call_operand.vmem [shape: f32[1,32], index: 4, kind: input, shape index: {}]   ;;  %s539_s5 = inlined_call_operand.hbm [shape: f32[16,32], index: 5, kind: output, shape index: {}]  }
   0x1   :  { %v30_v0 = vld [vmem:[%s535_s1] sm:$0xff]  ;;  %v31_v1 = vld [vmem:[%s535_s1 + $0x8] sm:$0xff]  ;;  %v32_v2 = vld [vmem:[%s535_s1 + $0x10] sm:$0xff] }
   0x2   :  { %v336_v3 = vpack.c.bf16 %v31_v1, %v30_v0  ;;  %v33_v4 = vld [vmem:[%s535_s1 + $0x18] sm:$0xff]  ;;  %v28_v5 = vld [vmem:[%s534_s0] sm:$0xff]  ;;  %v136_v8 = vld [vmem:[%s537_s3 + $0x8] sm:$0xff] }
   0x3   :  { %v340_v6 = vpack.c.bf16 %v33_v4, %v32_v2  ;;  %298 = vmatprep.mubr.msk.f32.mxu0 %vm25_vm0, %v28_v5  ;;  %v135_v7 = vld [vmem:[%s537_s3] sm:$0xff]  ;;  %v137_v9 = vld [vmem:[%s537_s3 + $0x10] sm:$0xff]  ;;  %v138_v11 = vld [vmem:[%s537_s3 + $0x18] sm:$0xff] }
   0x4   :  { %337 = vmatprep.subr.bf16.mxu0 %v336_v3  ;;  %v344_v10 = vpack.c.bf16 %v136_v8, %v135_v7  ;;  %v348_v12 = vpack.c.bf16 %v138_v11, %v137_v9  ;;  %v139_v13 = vld [vmem:[%s537_s3 + $0x20] sm:$0xff]  ;;  %v140_v14 = vld [vmem:[%s537_s3 + $0x28] sm:$0xff] }
   0x5   :  { %339 = vmatpush3.bf16.msra.mxu0 %v336_v3 }
   0x6   :  { %10 = vsyncpa [#allocation4], 0  ;;  %341 = vmatprep.subr.bf16.mxu0 %v340_v6  ;;  %345 = vmatprep.subr.bf16.mxu1 %v344_v10  ;;  %v352_v15 = vpack.c.bf16 %v140_v14, %v139_v13  ;;  %v29_v16 = vld [vmem:[%s534_s0 + $0x8] sm:$0xff]  ;;  %v141_v17 = vld [vmem:[%s537_s3 + $0x30] sm:$0xff]  ;;  %v408_v32 = vmov 0.0   ;;  %s409_s11 = smov [#allocation3]  }
   0x7   :  { %347 = vmatpush3.bf16.msra.mxu1 %v344_v10  ;;  %v142_v18 = vld [vmem:[%s537_s3 + $0x38] sm:$0xff]  ;;  %v143_v20 = vld [vmem:[%s537_s3 + $0x40] sm:$0xff]  ;;  %v144_v21 = vld [vmem:[%s537_s3 + $0x48] sm:$0xff]  ;;  %27 = vst.msk [vmem:[#allocation2 + $0x8] sm:$0xff] %vm25_vm0, %v408_v32  ;;  %s251_s12 = sshll.u32 %s409_s11, 4  ;;  %s252_s12 = int_to_ptr.vmem [resolvable:$true] %s251_s12 }
   0x8   :  { %349 = vmatprep.subr.bf16.mxu1 %v348_v12  ;;  %v356_v19 = vpack.c.bf16 %v142_v18, %v141_v17  ;;  %v360_v22 = vpack.c.bf16 %v144_v21, %v143_v20  ;;  %v145_v23 = vld [vmem:[%s537_s3 + $0x50] sm:$0xff]  ;;  %v146_v24 = vld [vmem:[%s537_s3 + $0x58] sm:$0xff]  ;;  %v147_v26 = vld [vmem:[%s537_s3 + $0x60] sm:$0xff]  ;;  %26 = vst.msk [vmem:[#allocation2] sm:$0xff] %vm25_vm0, %v408_v32  ;;  %s384_s13 = scalar_lea.vmem %s252_s12, 256  ;;  %p389_p1 = scmp.lt.s32.totalorder %s252_s12, %s252_s12 }
   0x9   :  { %343 = vmatpush3.bf16.msra.mxu0 %v340_v6  ;;  %v364_v25 = vpack.c.bf16 %v146_v24, %v145_v23  ;;  %v148_v27 = vld [vmem:[%s537_s3 + $0x68] sm:$0xff]  ;;  %v149_v29 = vld [vmem:[%s537_s3 + $0x70] sm:$0xff]  ;;  %v150_v30 = vld [vmem:[%s537_s3 + $0x78] sm:$0xff]  ;;  %p385_p0 = scmp.ne.s32.totalorder %s252_s12, %s384_s13  ;;  %p390_p2 = scmp.lt.s32.totalorder %s384_s13, %s384_s13 }
   0xa   :  { %v368_v28 = vpack.c.bf16 %v148_v27, %v147_v26  ;;  %v372_v31 = vpack.c.bf16 %v150_v30, %v149_v29  ;;  %v262_v33 = vld [vmem:[%s536_s2] ss:$0 sm:$0xff] }
   0xb   :  { %351 = vmatpush3.bf16.msra.mxu1 %v348_v12  ;;  %v265_v54 = vld [vmem:[%s538_s4] ss:$0 sm:$0xff]  ;;  %p391_p3 = por %p390_p2, %p389_p1 }
   0xc   :  { %299 = vmatmul.mubr.msk.f32.vlgmr.msra.gmra.mrb[0].mxu0 %vm25_vm0, %v29_v16  ;;  %353 = vmatprep.subr.bf16.mxu1 %v352_v15 }
   0xd   :  { %p392_p4 = pnand %p391_p3, %p385_p0 }
   0xe   :  { %v134_v48 = vld [vmem:[#allocation2 + $0x8] sm:$0xff] }
   0xf   :  { %355 = vmatpush3.bf16.msra.mxu1 %v352_v15  ;;  %v133_v49 = vld [vmem:[#allocation2] sm:$0xff] }
  0x10   :  { %357 = vmatprep.subr.bf16.mxu1 %v356_v19 }
  0x13   :  { %359 = vmatpush3.bf16.msra.mxu1 %v356_v19 }
  0x14   :  { %361 = vmatprep.subr.bf16.mxu1 %v360_v22 }
  0x17   :  { %363 = vmatpush3.bf16.msra.mxu1 %v360_v22 }
  0x18   :  { %365 = vmatprep.subr.bf16.mxu1 %v364_v25 }
  0x1b   :  { %367 = vmatpush3.bf16.msra.mxu1 %v364_v25 }
  0x1c   :  { %369 = vmatprep.subr.bf16.mxu1 %v368_v28 }
  0x1f   :  { %371 = vmatpush3.bf16.msra.mxu1 %v368_v28 }
  0x20   :  { %373 = vmatprep.subr.bf16.mxu1 %v372_v31 }
  0x23   :  { %375 = vmatpush3.bf16.msra.mxu1 %v372_v31 }
  0xdf   :  { %v300_v34 = vpop.f32.mrb[0].mxu0 }
  0xe0   :  { %v120_v35 = vadd.f32 %v300_v34, %v262_v33  ;;  %v114_v36 = vpop.f32.mrb[1].mxu0 }
  0xe1   :  { %v115_v37 = vadd.f32 %v262_v33, %v114_v36 }
  0xe2   :  { %v126_v38 = vmul.f32 0.70710677, %v120_v35  ;;  %v124_v45 = vmul.f32 0.5, %v120_v35 }
  0xe3   :  { %v125_v39 = vmul.f32 0.70710677, %v115_v37  ;;  %v123_v43 = vmul.f32 0.5, %v115_v37 }
  0xe4   :  { %380 = verf.f32 %v126_v38 }
  0xe5   :  { %382 = verf.f32 %v125_v39 }
  0xee   :  { %v381_v40 = vpop.eup %380 }
  0xef   :  { %v383_v41 = vpop.eup %382  ;;  %v130_v42 = vadd.f32 1.0, %v381_v40 }
  0xf0   :  { %v129_v44 = vadd.f32 1.0, %v383_v41 }
  0xf1   :  { %v132_v47 = vmul.f32 %v130_v42, %v124_v45 }
  0xf2   :  { %v131_v46 = vmul.f32 %v129_v44, %v123_v43 }
  0xf4   :  { %333 = vmatprep.mubr.f32.mxu1 %v131_v46 }
  0xf5   :  { %334 = vmatmul.mubr.f32.vlgmr.msra.gmra.mrb[0].mxu1 %v132_v47 }
 0x1c8   :  { %v335_v50 = vpop.f32.mrb[0].mxu1 }
 0x1c9   :  { %v227_v51 = vadd.f32 %v335_v50, %v134_v48  ;;  %v217_v52 = vpop.f32.mrb[1].mxu1 }
 0x1ca   :  { %v226_v53 = vadd.f32 %v217_v52, %v133_v49 }
 0x1cb   :  { %229 = vst.msk [vmem:[#allocation2 + $0x8] sm:$0xff] %vm25_vm0, %v227_v51 }
 0x1cc   :  { %228 = vst.msk [vmem:[#allocation2] sm:$0xff] %vm25_vm0, %v226_v53 }
 0x1d2   :  { %v234_v55 = vld [vmem:[#allocation2 + $0x8] sm:$0xff] }
 0x1d3   :  { %v233_v56 = vld [vmem:[#allocation2] sm:$0xff]  ;;  %v243_v57 = vadd.f32 %v265_v54, %v234_v55 }
 0x1d4   :  { %v242_v58 = vadd.f32 %v265_v54, %v233_v56 }
 0x1d5   :  { %245 = vst.msk [vmem:[#allocation3 + $0x8] sm:$0xff] %vm25_vm0, %v243_v57 }
 0x1d6   :  { %244 = vst.msk [vmem:[#allocation3] sm:$0xff] %vm25_vm0, %v242_v58 }
 0x1d7   :  { %395 = shalt.err (!%p392_p4)
}
 0x1d8   :  { %s396_s15 = scalar_lea.hbm %s539_s5, 256 }
 0x1d9   :  { %p397_p5 = scmp.ne.s32.totalorder %s539_s5, %s396_s15  ;;  %p400_p6 = scmp.lt.u32.totalorder %s396_s15, %s539_s5 }
 0x1db   :  { %p402_p7 = pnand %p400_p6, %p397_p5 }
 0x1dd   :  { %405 = shalt.err (!%p402_p7)
}
 0x1de   :  { %s410_s20 = smov 128   ;;  %s411_s21 = smov 8  }
 0x1df   :  { %257 = dma.vmem_to_hbm [thread:$0]  %s252_s12, 256, %s539_s5, [#allocation4], %s410_s20, %s410_s20, %s411_s21  }
 0x1e0   :  { %406 = dma.done.wait [#allocation4], 256  }
 0x1e1   :  { %407 = vsyncadd [#allocation4], 4294967040 }
 0x1e2   :  { %261 = vsyncpa [#allocation4], 1 }

</bundles_post_ra>
